<compile_context>
chip_gen: v7x
topology: tpu7x:2x2x1
jax: 0.10.0
libtpu: 0.0.40
codegen_flags: <defaults>
</compile_context>

<pallas_src>
import math

import jax
import jax.numpy as jnp
from jax.experimental import pallas as pl
from jax.experimental.pallas import tpu as pltpu


# ---------------------------------------------------------------------------
# Kernels
# ---------------------------------------------------------------------------
def _ffn_kernel_resident(x_ref, w1_ref, b1_ref, w2_ref, b2_ref, o_ref):
    """Both weights VMEM-resident; one row tile per grid step."""
    x = x_ref[...].astype(w1_ref.dtype)
    h = jnp.dot(x, w1_ref[...], preferred_element_type=jnp.float32)
    h = jnp.maximum(h + b1_ref[...], 0.0)            # bias + ReLU in f32 (VPU)
    # TODO(synk): nn.Dropout(p=0.1) is treated as identity (inference path);
    # a training path would need an in-kernel pltpu.prng_* mask.
    y = jnp.dot(h.astype(w2_ref.dtype), w2_ref[...],
                preferred_element_type=jnp.float32)
    o_ref[...] = (y + b2_ref[...]).astype(o_ref.dtype)


def _ffn_kernel_dff_tiled(x_ref, w1_ref, b1_ref, w2_ref, b2_ref, o_ref, acc_ref):
    """d_ff-tiled reduction: grid = (row tiles, d_ff tiles), f32 accumulator."""
    kf = pl.program_id(1)

    @pl.when(kf == 0)
    def _():
        acc_ref[...] = jnp.zeros_like(acc_ref)

    x = x_ref[...].astype(w1_ref.dtype)
    h = jnp.dot(x, w1_ref[...], preferred_element_type=jnp.float32)
    h = jnp.maximum(h + b1_ref[...], 0.0)            # per-d_ff-slice bias + ReLU
    # TODO(synk): dropout treated as identity here as well.
    acc_ref[...] += jnp.dot(h.astype(w2_ref.dtype), w2_ref[...],
                            preferred_element_type=jnp.float32)

    @pl.when(kf == pl.num_programs(1) - 1)
    def _():
        o_ref[...] = (acc_ref[...] + b2_ref[...]).astype(o_ref.dtype)


# ---------------------------------------------------------------------------
# Helpers
# ---------------------------------------------------------------------------
def _round_up(n, m):
    return (n + m - 1) // m * m


def _vmem_capacity_bytes():
    try:
        return int(pltpu.get_tpu_info().vmem_capacity_bytes)
    except Exception:
        return 64 * 1024 * 1024          # conservative fallback (v7x per-TC)


def _choose_tm(M, block_rows):
    """Row-tile size: big, multiple of 8, >=2 grid steps when possible, and
    dividing round_up(M, 8) whenever possible so no big padded copy of x."""
    M8 = _round_up(max(M, 1), 8)
    block_rows = max(8, _round_up(block_rows, 8))
    tm = min(block_rows, M8)
    # Keep >= 2 row steps so the 'parallel' axis can split across v7x's 2 TCs.
    if M8 >= 16 and -(-M8 // tm) < 2:
        tm = _round_up(-(-M8 // 2), 8)
    # Prefer a tm that divides M8 -> only the tiny 8-row-rounding pad remains.
    if M8 % tm:
        for cand in range(tm, max(8, tm // 2) - 1, -8):
            if M8 % cand == 0:
                tm = cand
                break
    Mp = _round_up(M8, tm)
    return tm, Mp


def _choose_tf(d_ff, d_model, tm, w_bytes, x_bytes, o_bytes, budget):
    """Largest d_ff tile (multiple of 128, dividing d_ff) that fits the budget."""
    if d_ff % 128 != 0:
        return d_ff                       # block == full dim; still layout-legal
    fixed = (2 * tm * d_model * (x_bytes + o_bytes)   # double-buffered x / out
             + tm * d_model * 4                       # accumulator
             + d_model * 4 + (2 << 20))               # b2 + slack
    for tf in range(d_ff, 127, -128):
        if d_ff % tf:
            continue
        need = fixed + 2 * (2 * d_model * tf * w_bytes + tf * 4) + tm * tf * 4
        if need <= budget:
            return tf
    return 128


def prepare_ffn_params(W1, b1, W2, b2, compute_dtype=jnp.bfloat16):
    """Pre-transpose + pre-cast PyTorch-layout Linear params ONCE (cache these).

    W1: (d_ff, d_model), b1: (d_ff,), W2: (d_model, d_ff), b2: (d_model,).
    """
    W1 = jnp.asarray(W1)
    W2 = jnp.asarray(W2)
    d_ff, d_model = W1.shape
    assert W2.shape == (d_model, d_ff)
    assert jnp.asarray(b1).shape == (d_ff,) and jnp.asarray(b2).shape == (d_model,)
    return dict(
        w1t=W1.T.astype(compute_dtype),                        # (d_model, d_ff)
        b1=jnp.asarray(b1).reshape(1, d_ff).astype(jnp.float32),
        w2t=W2.T.astype(compute_dtype),                        # (d_ff, d_model)
        b2=jnp.asarray(b2).reshape(1, d_model).astype(jnp.float32),
    )


# ---------------------------------------------------------------------------
# Forward
# ---------------------------------------------------------------------------
def positionwise_feed_forward(x, params, *, block_rows=512, block_ff=None,
                              out_dtype=None, force_path=None):
    """Returns (y, None) exactly like the nn.Module forward (dropout=identity).

    `params` comes from prepare_ffn_params(); `force_path` in
    {None, "resident", "tiled"} (None = auto by VMEM budget).
    """
    w1t, b1, w2t, b2 = params["w1t"], params["b1"], params["w2t"], params["b2"]
    d_model, d_ff = w1t.shape
    orig_shape = x.shape
    assert orig_shape[-1] == d_model
    out_dtype = jnp.dtype(out_dtype) if out_dtype is not None else x.dtype

    M = int(math.prod(orig_shape[:-1]))
    xm = x.reshape(M, d_model)            # native dtype; no forced f32 copy

    tm, Mp = _choose_tm(M, block_rows)
    if Mp != M:
        # tm was chosen to divide round_up(M, 8) whenever possible, so this pad
        # is (almost always) just the <8-row ragged tail, not a full copy of x.
        xm = jnp.pad(xm, ((0, Mp - M), (0, 0)))

    x_bytes = jnp.dtype(xm.dtype).itemsize
    o_bytes = jnp.dtype(out_dtype).itemsize
    w_bytes = jnp.dtype(w1t.dtype).itemsize

    cap = _vmem_capacity_bytes()
    budget = int(0.75 * cap)              # ~96 MiB on v5e/v6e, ~48 MiB on v7x

    resident_fp = (2 * d_model * d_ff * w_bytes          # W1T + W2T, single-buffered
                   + (d_ff + d_model) * 4                # biases
                   + 2 * tm * d_model * (x_bytes + o_bytes)  # x / out, double-buffered
                   + tm * d_ff * 4                       # f32 hidden intermediate
                   + (2 << 20))
    use_tiled = (force_path == "tiled"
                 or (force_path != "resident" and resident_fp > budget))

    flops = 4 * Mp * d_model * d_ff
    bytes_accessed = (Mp * d_model * (x_bytes + o_bytes)
                      + 2 * d_model * d_ff * w_bytes + (d_ff + d_model) * 4)
    cost = pl.CostEstimate(flops=flops, transcendentals=0,
                           bytes_accessed=bytes_accessed)

    if not use_tiled:
        vmem_limit = int(min(cap - (8 << 20),
                             max(resident_fp + (8 << 20), 32 << 20)))
        out = pl.pallas_call(
            _ffn_kernel_resident,
            out_shape=jax.ShapeDtypeStruct((Mp, d_model), out_dtype),
            grid_spec=pltpu.PrefetchScalarGridSpec(
                num_scalar_prefetch=0,
                grid=(Mp // tm,),
                in_specs=[
                    pl.BlockSpec((tm, d_model), lambda i: (i, 0)),
                    # grid-invariant weights/biases: single-buffered residents
                    pl.BlockSpec((d_model, d_ff), lambda i: (0, 0),
                                 pipeline_mode=pl.Buffered(1)),
                    pl.BlockSpec((1, d_ff), lambda i: (0, 0),
                                 pipeline_mode=pl.Buffered(1)),
                    pl.BlockSpec((d_ff, d_model), lambda i: (0, 0),
                                 pipeline_mode=pl.Buffered(1)),
                    pl.BlockSpec((1, d_model), lambda i: (0, 0),
                                 pipeline_mode=pl.Buffered(1)),
                ],
                out_specs=pl.BlockSpec((tm, d_model), lambda i: (i, 0)),
            ),
            compiler_params=pltpu.CompilerParams(
                dimension_semantics=("parallel",),
                vmem_limit_bytes=vmem_limit,
            ),
            cost_estimate=cost,
        )(xm, w1t, b1, w2t, b2)
    else:
        tf = block_ff if block_ff is not None else _choose_tf(
            d_ff, d_model, tm, w_bytes, x_bytes, o_bytes, budget)
        assert d_ff % tf == 0, "block_ff must divide d_ff"
        tiled_fp = (2 * (2 * d_model * tf * w_bytes + tf * 4)  # W1/W2/b1 blocks, 2x buf
                    + d_model * 4                              # b2
                    + 2 * tm * d_model * (x_bytes + o_bytes)   # x / out
                    + tm * d_model * 4                         # accumulator
                    + tm * tf * 4                              # hidden intermediate
                    + (2 << 20))
        vmem_limit = int(min(cap - (8 << 20),
                             max(tiled_fp + (8 << 20), 32 << 20)))
        out = pl.pallas_call(
            _ffn_kernel_dff_tiled,
            out_shape=jax.ShapeDtypeStruct((Mp, d_model), out_dtype),
            grid_spec=pltpu.PrefetchScalarGridSpec(
                num_scalar_prefetch=0,
                grid=(Mp // tm, d_ff // tf),
                in_specs=[
                    pl.BlockSpec((tm, d_model), lambda i, kf: (i, 0)),
                    pl.BlockSpec((d_model, tf), lambda i, kf: (0, kf)),
                    pl.BlockSpec((1, tf), lambda i, kf: (0, kf)),
                    pl.BlockSpec((tf, d_model), lambda i, kf: (kf, 0)),
                    pl.BlockSpec((1, d_model), lambda i, kf: (0, 0),
                                 pipeline_mode=pl.Buffered(1)),
                ],
                out_specs=pl.BlockSpec((tm, d_model), lambda i, kf: (i, 0)),
                scratch_shapes=[pltpu.VMEM((tm, d_model), jnp.float32)],
            ),
            compiler_params=pltpu.CompilerParams(
                dimension_semantics=("parallel", "arbitrary"),
                vmem_limit_bytes=vmem_limit,
            ),
            cost_estimate=cost,
        )(xm, w1t, b1, w2t, b2)

    out = out[:M].reshape(orig_shape)
    return out, None


def _reference(x, W1, b1, W2, b2):
    """Pure-JAX f32 transcription of the PyTorch forward (dropout = identity)."""
    hp = jax.lax.Precision.HIGHEST
    h = jnp.maximum(jnp.einsum("...d,fd->...f", x, W1, precision=hp) + b1, 0.0)
    y = jnp.einsum("...f,df->...d", h, W2, precision=hp) + b2
    return y, None


if __name__ == "__main__":
    B, S, D_MODEL, D_FF = 2, 16, 128, 256
    root = jax.random.PRNGKey(0)
    kx, k1w, k1b, k2w, k2b = jax.random.split(root, 5)

    x = jax.random.normal(kx, (B, S, D_MODEL), dtype=jnp.float32)

    def lin_init(kw, kb, fan_in, fan_out):
        bound = 1.0 / math.sqrt(fan_in)
        W = jax.random.uniform(kw, (fan_out, fan_in), jnp.float32, -bound, bound)
        b = jax.random.uniform(kb, (fan_out,), jnp.float32, -bound, bound)
        return W, b

    W1, b1 = lin_init(k1w, k1b, D_MODEL, D_FF)    # nn.Linear(d_model, d_ff)
    W2, b2 = lin_init(k2w, k2b, D_FF, D_MODEL)    # nn.Linear(d_ff, d_model)

    params = prepare_ffn_params(W1, b1, W2, b2)   # transpose + bf16 cast ONCE
    ref, _ = _reference(x, W1, b1, W2, b2)

    # 1) resident-weight path (auto-selected at these sizes), f32 activations.
    out_r, aux = positionwise_feed_forward(x, params, force_path="resident")
    out_r = jax.block_until_ready(out_r)
    assert aux is None and out_r.shape == (B, S, D_MODEL)
    assert bool(jnp.allclose(out_r, ref, rtol=5e-2, atol=5e-2)), "resident mismatch"

    # 2) d_ff-tiled accumulation path (auto-selected at transformer sizes / v7x).
    out_t, _ = positionwise_feed_forward(x, params, force_path="tiled",
                                         block_ff=128)
    out_t = jax.block_until_ready(out_t)
    assert bool(jnp.allclose(out_t, ref, rtol=5e-2, atol=5e-2)), "tiled mismatch"

    # 3) bf16 activation streaming (halved x/out DMA traffic).
    out_b, _ = positionwise_feed_forward(x.astype(jnp.bfloat16), params)
    out_b = jax.block_until_ready(out_b)
    assert out_b.dtype == jnp.bfloat16
    assert bool(jnp.allclose(out_b.astype(jnp.float32), ref,
                             rtol=1e-1, atol=1e-1)), "bf16 streaming mismatch"

    print("KERNEL_OK")
</pallas_src>

<mosaic_0001>
module attributes {stable_mosaic.version = 11 : i64} {
  func.func @_ffn_kernel_resident(%arg0: i32, %arg1: memref<16x128xf32, #tpu.memory_space<vmem>>, %arg2: memref<128x256xbf16, #tpu.memory_space<vmem>>, %arg3: memref<1x256xf32, #tpu.memory_space<vmem>>, %arg4: memref<256x128xbf16, #tpu.memory_space<vmem>>, %arg5: memref<1x128xf32, #tpu.memory_space<vmem>>, %arg6: memref<16x128xf32, #tpu.memory_space<vmem>>) attributes {dimension_semantics = [#tpu.dimension_semantics<parallel>], iteration_bounds = array<i64: 2>, scalar_prefetch = 0 : i64, scratch_operands = 0 : i64, tpu.core_type = #tpu.core_type<tc>, window_params = [{transform_indices = @transform_0, window_bounds = array<i64: 16, 128>}, {pipeline_mode = #tpu.pipeline_mode<synchronous>, transform_indices = @transform_1, window_bounds = array<i64: 128, 256>}, {pipeline_mode = #tpu.pipeline_mode<synchronous>, transform_indices = @transform_2, window_bounds = array<i64: 1, 256>}, {pipeline_mode = #tpu.pipeline_mode<synchronous>, transform_indices = @transform_3, window_bounds = array<i64: 256, 128>}, {pipeline_mode = #tpu.pipeline_mode<synchronous>, transform_indices = @transform_4, window_bounds = array<i64: 1, 128>}, {transform_indices = @transform_5, window_bounds = array<i64: 16, 128>}]} {
    %c0 = arith.constant 0 : index
    %c0_0 = arith.constant 0 : index
    %0 = vector.load %arg1[%c0, %c0_0] : memref<16x128xf32, #tpu.memory_space<vmem>>, vector<16x128xf32>
    %1 = arith.truncf %0 : vector<16x128xf32> to vector<16x128xbf16>
    %c0_1 = arith.constant 0 : index
    %c0_2 = arith.constant 0 : index
    %2 = vector.load %arg2[%c0_1, %c0_2] : memref<128x256xbf16, #tpu.memory_space<vmem>>, vector<128x256xbf16>
    %cst = arith.constant dense<0.000000e+00> : vector<16x256xf32>
    %3 = tpu.matmul %1, %2, %cst {dimension_numbers = #tpu.dot_dimension_numbers<[1], [0], [0], [1], [0, 0, 1, 1], [], []>} : vector<16x128xbf16>, vector<128x256xbf16>, vector<16x256xf32> -> vector<16x256xf32>
    %c0_3 = arith.constant 0 : index
    %c0_4 = arith.constant 0 : index
    %4 = vector.load %arg3[%c0_3, %c0_4] : memref<1x256xf32, #tpu.memory_space<vmem>>, vector<1x256xf32>
    %5 = vector.broadcast %4 : vector<1x256xf32> to vector<16x256xf32>
    %6 = arith.addf %3, %5 : vector<16x256xf32>
    %cst_5 = arith.constant 0.000000e+00 : f32
    %7 = vector.broadcast %cst_5 : f32 to vector<16x256xf32>
    %8 = arith.maximumf %6, %7 : vector<16x256xf32>
    %9 = arith.truncf %8 : vector<16x256xf32> to vector<16x256xbf16>
    %c0_6 = arith.constant 0 : index
    %c0_7 = arith.constant 0 : index
    %10 = vector.load %arg4[%c0_6, %c0_7] : memref<256x128xbf16, #tpu.memory_space<vmem>>, vector<256x128xbf16>
    %cst_8 = arith.constant dense<0.000000e+00> : vector<16x128xf32>
    %11 = tpu.matmul %9, %10, %cst_8 {dimension_numbers = #tpu.dot_dimension_numbers<[1], [0], [0], [1], [0, 0, 1, 1], [], []>} : vector<16x256xbf16>, vector<256x128xbf16>, vector<16x128xf32> -> vector<16x128xf32>
    %c0_9 = arith.constant 0 : index
    %c0_10 = arith.constant 0 : index
    %12 = vector.load %arg5[%c0_9, %c0_10] : memref<1x128xf32, #tpu.memory_space<vmem>>, vector<1x128xf32>
    %13 = vector.broadcast %12 : vector<1x128xf32> to vector<16x128xf32>
    %14 = arith.addf %11, %13 : vector<16x128xf32>
    %c0_11 = arith.constant 0 : index
    %c0_12 = arith.constant 0 : index
    %15 = vector.load %arg6[%c0_11, %c0_12] : memref<16x128xf32, #tpu.memory_space<vmem>>, vector<16x128xf32>
    tpu.vector_store %arg6[%c0_11, %c0_12], %14 {strides = array<i32>} : memref<16x128xf32, #tpu.memory_space<vmem>>, vector<16x128xf32>,
    return
  }
  func.func @transform_0(%arg0: i32) -> (i32, i32) {
    %c0_i32 = arith.constant 0 : i32
    %c0_i32_0 = arith.constant 0 : i32
    return %arg0, %c0_i32 : i32, i32
  }
  func.func @transform_1(%arg0: i32) -> (i32, i32) {
    %c0_i32 = arith.constant 0 : i32
    %c0_i32_0 = arith.constant 0 : i32
    %c0_i32_1 = arith.constant 0 : i32
    return %c0_i32, %c0_i32_0 : i32, i32
  }
  func.func @transform_2(%arg0: i32) -> (i32, i32) {
    %c0_i32 = arith.constant 0 : i32
    %c0_i32_0 = arith.constant 0 : i32
    %c0_i32_1 = arith.constant 0 : i32
    return %c0_i32, %c0_i32_0 : i32, i32
  }
  func.func @transform_3(%arg0: i32) -> (i32, i32) {
    %c0_i32 = arith.constant 0 : i32
    %c0_i32_0 = arith.constant 0 : i32
    %c0_i32_1 = arith.constant 0 : i32
    return %c0_i32, %c0_i32_0 : i32, i32
  }
  func.func @transform_4(%arg0: i32) -> (i32, i32) {
    %c0_i32 = arith.constant 0 : i32
    %c0_i32_0 = arith.constant 0 : i32
    %c0_i32_1 = arith.constant 0 : i32
    return %c0_i32, %c0_i32_0 : i32, i32
  }
  func.func @transform_5(%arg0: i32) -> (i32, i32) {
    %c0_i32 = arith.constant 0 : i32
    %c0_i32_0 = arith.constant 0 : i32
    return %arg0, %c0_i32 : i32, i32
  }
}

</mosaic_0001>

<bundles_post_ra>
// kernel: tpu_custom_call.1
= control target key start
LH: loop header
LB: loop body
LE: loop exit
PB: predicated region body
PF: predicated region fallthrough
CT: control target
= control target key end

     0   :  { %10 = vsyncpa [#allocation3], 0  ;;  %s1361_s0 = inlined_call_operand.hbm [shape: f32[32,128], index: 0, kind: input, shape index: {}]   ;;  %s1362_s1 = inlined_call_operand.hbm [shape: bf16[128,256], index: 1, kind: input, shape index: {}]   ;;  %s1363_s2 = inlined_call_operand.vmem [shape: f32[1,256], index: 2, kind: input, shape index: {}]   ;;  %s1364_s3 = inlined_call_operand.hbm [shape: bf16[256,128], index: 3, kind: input, shape index: {}]   ;;  %s1365_s4 = inlined_call_operand.vmem [shape: f32[1,128], index: 4, kind: input, shape index: {}]   ;;  %s1366_s5 = inlined_call_operand.hbm [shape: f32[32,128], index: 5, kind: output, shape index: {}]  }
   0x1   :  { %12 = vsyncpa [#allocation3 + $0x1], 0 }
   0x2   :  { %13 = vsyncpa [#allocation6], 0 }
   0x3   :  { %14 = vsyncpa [#allocation4], 0 }
   0x4   :  { %16 = vsyncpa [#allocation4 + $0x1], 0  ;;  %s1107_s18 = smov 0   ;;  %s1109_s19 = smov 0  }
   0x5   :  { %s1111_s20 = smov 0   ;;  %s1113_s21 = smov 0  }
   0x6 LB: > { %s1128_s22 = sadd.s32 4294967295, %s1064_s21   ;;  %s719_s23 = sadd.s32 4294967294, %s1064_s21   ;;  %s1064_s21 = sphi %s1113_s21, %s1386_s21   ;;  %s1060_s20 = sphi %s1111_s20, %s1385_s20   ;;  %s1056_s19 = sphi %s1109_s19, %s1384_s19   ;;  %s1052_s18 = sphi %s1107_s18, %s1383_s18  }
   0x7   : > { %p42_p0 = scmp.ne.s32.totalorder %s1056_s19, %s1052_s18  ;;  %p1367_p1 = scmp.eq.s32.totalorder %s1128_s22, 0 }
   0x8   : > { %p156_p3 = scmp.eq.s32.totalorder %s719_s23, 1  ;;  %p720_p5 = scmp.ge.s32.totalorder %s1064_s21, 1 }
   0x9   : > { %p1137_p4 = por %p1367_p1, %p42_p0  ;;  %p163_p7 = scmp.lt.s32.totalorder %s1064_s21, 3 }
   0xa   : > { %p1142_p6 = por %p156_p3, %p42_p0  ;;  %s1066_s27 = smov [#allocation5]  }
   0xb   : > { %s1370_s24 = scalar_select %p1137_p4, 1, 0 }
   0xc   : > { %s1371_s25 = scalar_select %p1142_p6, 1, 0 }
   0xd   : > { %p1147_p8 = pnand %p720_p5, %p163_p7  ;;  %s175_s28 = sshll.u32 %s1066_s27, 4  ;;  %s1151_s28 = int_to_ptr.vmem [resolvable:$true] %s175_s28 }
   0xe   : > { %s1067_s30 = smov [#allocation7]   ;;  %s908_s9 = scalar_lea.hbm %s1362_s1, 2048 }
   0xf   : > { %p806_p9 = pneg %p1147_p8  ;;  %s191_s6 = sshll.u32 %s1067_s30, 4  ;;  %s1162_s6 = int_to_ptr.vmem [resolvable:$true] %s191_s6 }
  0x10   : > { %p909_p12 = scmp.ne.s32.totalorder %s1362_s1, %s908_s9  ;;  %p915_p5 = scmp.lt.u32.totalorder %s908_s9, %s1362_s1 }
  0x11   : > { %p1158_p11 = pnand %p806_p9, %p1367_p1 }
  0x13   : > { %p910_p13 = pneg %p1158_p11 }
  0x15   : > { %p911_p0 = pnand %p910_p13, %p909_p12 }
  0x17   : > { %p912_p3 = pneg %p911_p0 }
  0x19   : > { %p917_p7 = pnand %p915_p5, %p912_p3 }
  0x1b   : > { %920 = shalt.err (!%p917_p7)
}
  0x1c   : > { %s921_s14 = scalar_lea.vmem %s1151_s28, 2048  ;;  %p929_p2 = scmp.lt.s32.totalorder %s1151_s28, %s1151_s28 }
  0x1d   : > { %p922_p9 = scmp.ne.s32.totalorder %s1151_s28, %s921_s14  ;;  %p930_p12 = scmp.lt.s32.totalorder %s921_s14, %s921_s14 }
  0x1f   : > { %p924_p10 = pnand %p922_p9, %p910_p13  ;;  %p931_p0 = por %p930_p12, %p929_p2 }
  0x21   : > { %p925_p1 = pneg %p924_p10 }
  0x23   : > { %p932_p6 = pnand %p931_p0, %p925_p1 }
  0x25   : > { %935 = shalt.err (!%p932_p6)
}
  0x26   : > { %s1068_s15 = smov 128   ;;  %s1069_s16 = smov 8  }
  0x27   : > { %809 = dma.hbm_to_vmem [thread:$0]  (!%p1158_p11), %s1362_s1, 2048, %s1151_s28, [#allocation6], %s1068_s15, %s1068_s15, %s1069_s16  }
  0x28   : > { %s936_s7 = scalar_lea.hbm %s1364_s3, 2048 }
  0x29   : > { %p937_p1 = scmp.ne.s32.totalorder %s1364_s3, %s936_s7  ;;  %p943_p10 = scmp.lt.u32.totalorder %s936_s7, %s1364_s3 }
  0x2b   : > { %p939_p2 = pnand %p937_p1, %p910_p13 }
  0x2d   : > { %p940_p6 = pneg %p939_p2 }
  0x2f   : > { %p945_p3 = pnand %p943_p10, %p940_p6 }
  0x31   : > { %948 = shalt.err (!%p945_p3)
}
  0x32   : > { %s949_s28 = scalar_lea.vmem %s1162_s6, 2048  ;;  %p957_p12 = scmp.lt.s32.totalorder %s1162_s6, %s1162_s6 }
  0x33   : > { %p950_p5 = scmp.ne.s32.totalorder %s1162_s6, %s949_s28  ;;  %p958_p0 = scmp.lt.s32.totalorder %s949_s28, %s949_s28 }
  0x35   : > { %p952_p7 = pnand %p950_p5, %p910_p13  ;;  %p959_p1 = por %p958_p0, %p957_p12 }
  0x37   : > { %p953_p9 = pneg %p952_p7 }
  0x39   : > { %p960_p2 = pnand %p959_p1, %p953_p9 }
  0x3b   : > { %963 = shalt.err (!%p960_p2)
}
  0x3c   : > { %s1070_s12 = smov 64   ;;  %s1071_s13 = smov 4  }
  0x3d   : > { %812 = dma.hbm_to_vmem [thread:$0]  (!%p1158_p11), %s1364_s3, 2048, %s1162_s6, [#allocation6], %s1070_s12, %s1070_s12, %s1071_s13  }
  0x3e   : > { %s1220_s23 = sadd.s32 1, %s1064_s21   ;;  %s29_s30 = sadd.s32 1, %s1060_s20 }
  0x3f   : > { %s26_s27 = ssub.s32 %s1064_s21, %s1220_s23  ;;  %p36_p6 = scmp.ne.s32.totalorder %s1060_s20, %s1056_s19 }
  0x40   : > { %p27_p13 = scmp.eq.s32.totalorder %s26_s27, 0  ;;  %p37_p10 = scmp.eq.s32.totalorder %s1064_s21, 0 }
  0x41   : > { %p1374_p5 = scmp.eq.s32.totalorder %s1128_s22, 1  ;;  %p823_p9 = scmp.lt.s32.totalorder %s1064_s21, 2 }
  0x42   : > { %s1229_s7 = scalar_select %p27_p13, %s1060_s20, %s29_s30  }
  0x43   : > { %p38_p3 = por %p37_p10, %p36_p6  ;;  %p1233_p7 = por %p1374_p5, %p36_p6 }
  0x44   : > { %s208_s29 = sand.u32 1, %s1060_s20   ;;  %s770_s6 = sshll.u32 %s1064_s21, 8 }
  0x45   : > { %s1375_s8 = scalar_select %p1233_p7, 1, 0 }
  0x46   : > { %s724_s9 = sshll.u32 %s208_s29, 4  ;;  %s1243_s28 = scalar_lea.hbm %s1361_s0, %s770_s6 }
  0x47   : > { %s212_s12 = scalar_lea.vmem [#allocation2], %s724_s9  ;;  %p1247_p11 = pnand %p823_p9, %p38_p3 }
  0x48   : > { %s219_s13 = sshll.u32 %s212_s12, 4  ;;  %s1251_s17 = scalar_lea.sflag [#allocation3], %s208_s29  ;;  %s1245_s13 = int_to_ptr.vmem [resolvable:$true] %s219_s13 }
  0x49   : > { %s964_s27 = scalar_lea.hbm %s1243_s28, 256  ;;  %p966_p0 = pneg %p1247_p11 }
  0x4a   : > { %p965_p12 = scmp.ne.s32.totalorder %s1243_s28, %s964_s27  ;;  %s969_s6 = scalar_lea.hbm %s1361_s0, 512 }
  0x4b   : > { %p970_p13 = scmp.lt.u32.totalorder %s1243_s28, %s1361_s0  ;;  %p971_p6 = scmp.lt.u32.totalorder %s969_s6, %s964_s27 }
  0x4c   : > { %p967_p1 = pnand %p966_p0, %p965_p12  ;;  %p973_p3 = scmp.lt.u32.totalorder %s964_s27, %s1243_s28 }
  0x4d   : > { %p972_p10 = por %p971_p6, %p970_p13 }
  0x4e   : > { %p968_p2 = pneg %p967_p1 }
  0x4f   : > { %p974_p5 = por %p973_p3, %p972_p10 }
  0x51   : > { %p975_p9 = pnand %p974_p5, %p968_p2 }
  0x53   : > { %978 = shalt.err (!%p975_p9)
}
  0x54   : > { %s979_s29 = scalar_lea.vmem %s1245_s13, 256  ;;  %s1072_s12 = smov [#allocation2]  }
  0x55   : > { %p980_p12 = scmp.ne.s32.totalorder %s1245_s13, %s979_s29  ;;  %s984_s30 = sshll.u32 %s1072_s12, 4  ;;  %s985_s30 = int_to_ptr.vmem [resolvable:$false] %s984_s30 }
  0x56   : > { %s986_s9 = scalar_lea.vmem %s985_s30, 512  ;;  %p987_p4 = scmp.lt.s32.totalorder %s1245_s13, %s985_s30 }
  0x57   : > { %p982_p1 = pnand %p980_p12, %p966_p0  ;;  %p988_p13 = scmp.lt.s32.totalorder %s986_s9, %s979_s29 }
  0x59   : > { %p983_p7 = pneg %p982_p1  ;;  %p989_p6 = por %p988_p13, %p987_p4 }
  0x5b   : > { %p990_p10 = pnand %p989_p6, %p983_p7 }
  0x5d   : > { %993 = shalt.err (!%p990_p10)
}
  0x5e   : > { %816 = dma.hbm_to_vmem [thread:$0]  (!%p1247_p11), %s1243_s28, 256, %s1245_s13, %s1251_s17, %s1068_s15, %s1068_s15, %s1069_s16  }
  0x5f   : > { %231 = sbr.rel (%p1147_p8) target bundleno = 595 (0x253), region = 40  ;;  %s1285_s27 = sand.u32 (!%p1147_p8), 1, %s1056_s19  }
  0x60   : > { %s728_s6 = sshll.u32 (!%p1147_p8), %s1285_s27, 4  ;;  %s234_s10 = scalar_lea.sflag (!%p1147_p8), [#allocation3], %s1285_s27 }
  0x61   : > { %s1291_s14 = scalar_lea.vmem (!%p1147_p8), [#allocation2], %s728_s6  ;;  %p1377_p4 = scmp.ne.s32.totalorder (!%p1147_p8), %s1370_s24, 0 }
  0x66   : > { %1039 = dma.done.wait (%p1377_p4), %s234_s10, 256  }
  0x67   : > { %1041 = vsyncadd (%p1377_p4), %s234_s10, 4294967040  ;;  %p1378_p7 = scmp.eq.s32.totalorder %s1128_s22, 0 }
  0x69   : > { %1043 = dma.done.wait (%p1378_p7), [#allocation6], 4096   ;;  %p1379_p8 = pmov %p1378_p7 }
  0x6a   : > { %v1073_v0 = vmov 0   ;;  %v868_v1 = vld [vmem:[#allocation5 + $0x4] ss:$8 sps:$4 sm:$0xff]   ;;  %v870_v2 = vld [vmem:[#allocation5] ss:$8 sps:$4 sm:$0xff]   ;;  %v896_v16 = vld [vmem:[#allocation7 + $0x50] sm:$0xff]   ;;  %v296_v36 = vlaneseq }
  0x6b   : > { %1045 = vsyncadd (%p1379_p8), [#allocation6], 4294963200  ;;  %418 = vmatprep.mubr.bf16.mxu0 %v1073_v0  ;;  %386 = vmatprep.subr.bf16.mxu0 %v868_v1  ;;  %v871_v3 = vld [vmem:[#allocation5 + $0x14] ss:$8 sps:$4 sm:$0xff]   ;;  %v873_v4 = vld [vmem:[#allocation5 + $0x10] ss:$8 sps:$4 sm:$0xff]  }
  0x6c   : > { %387 = vmatpush1.bf16.msra.mxu0 %v870_v2  ;;  %v874_v5 = vld [vmem:[#allocation5 + $0x24] ss:$8 sps:$4 sm:$0xff]   ;;  %v876_v6 = vld [vmem:[#allocation5 + $0x20] ss:$8 sps:$4 sm:$0xff]   ;;  %v877_v7 = vld [vmem:[#allocation5 + $0x34] ss:$8 sps:$4 sm:$0xff]  }
  0x6d   : > { %388 = vmatprep.subr.bf16.mxu0 %v871_v3  ;;  %v879_v8 = vld [vmem:[#allocation5 + $0x30] ss:$8 sps:$4 sm:$0xff]   ;;  %v880_v9 = vld [vmem:[#allocation5 + $0x44] ss:$8 sps:$4 sm:$0xff]   ;;  %v882_v11 = vld [vmem:[#allocation5 + $0x40] ss:$8 sps:$4 sm:$0xff]  }
  0x6e   : > { %v892_v10 = vld [vmem:[#allocation7 + $0x40] sm:$0xff]   ;;  %v883_v13 = vld [vmem:[#allocation5 + $0x54] ss:$8 sps:$4 sm:$0xff]   ;;  %v894_v14 = vld [vmem:[#allocation7 + $0x48] sm:$0xff]   ;;  %v297_v37 = vshrl.u32 %v296_v36, 7  ;;  %s271_s28 = scalar_lea.vmem [#allocation8], %s728_s6 }
  0x6f   : > { %v893_v12 = vld [vmem:[#allocation7] sm:$0xff]   ;;  %772 = vmatprep.subr.bf16.mxu1 %v892_v10  ;;  %v895_v15 = vld [vmem:[#allocation7 + $0x8] sm:$0xff]   ;;  %v885_v17 = vld [vmem:[#allocation5 + $0x50] ss:$8 sps:$4 sm:$0xff]   ;;  %s627_s13 = sshll.u32 %s271_s28, 4  ;;  %s771_s17 = sshll.u32 %s1128_s22, 8  ;;  %s1312_s13 = int_to_ptr.vmem [resolvable:$true] %s627_s13 }
  0x70   : > { %389 = vmatpush1.bf16.msra.mxu0 %v873_v4  ;;  %773 = vmatpush3.bf16.msra.mxu1 %v893_v12  ;;  %v886_v18 = vld [vmem:[#allocation5 + $0x64] ss:$8 sps:$4 sm:$0xff]   ;;  %v897_v19 = vld [vmem:[#allocation7 + $0x10] sm:$0xff]   ;;  %v898_v20 = vld [vmem:[#allocation7 + $0x58] sm:$0xff]   ;;  %v298_v38 = vsub.s32 0, %v297_v37  ;;  %v302_v40 = vsub.s32 1, %v297_v37  ;;  %s1317_s12 = scalar_lea.hbm %s1366_s5, %s771_s17 }
  0x71   : > { %390 = vmatprep.subr.bf16.mxu0 %v874_v5  ;;  %774 = vmatprep.subr.bf16.mxu1 %v894_v14  ;;  %v888_v21 = vld [vmem:[#allocation5 + $0x60] ss:$8 sps:$4 sm:$0xff]   ;;  %v889_v22 = vld [vmem:[#allocation5 + $0x74] ss:$8 sps:$4 sm:$0xff]   ;;  %v891_v25 = vld [vmem:[#allocation5 + $0x70] ss:$8 sps:$4 sm:$0xff]  }
  0x72   : > { %v899_v23 = vld [vmem:[#allocation7 + $0x18] sm:$0xff]   ;;  %v900_v24 = vld [vmem:[#allocation7 + $0x60] sm:$0xff]   ;;  %v902_v29 = vld [vmem:[#allocation7 + $0x68] sm:$0xff]   ;;  %s614_s30 = scalar_lea.sflag [#allocation4], %s1285_s27  ;;  %s994_s9 = scalar_lea.vmem %s1312_s13, 256 }
  0x73   : > { %v275_v26 = vld [vmem:[%s1291_s14] sm:$0xff]  ;;  %v276_v27 = vld [vmem:[%s1291_s14 + $0x8] sm:$0xff]  ;;  %p995_p11 = scmp.ne.s32.totalorder %s1312_s13, %s994_s9  ;;  %p1380_p0 = scmp.ne.s32.totalorder %s1375_s8, 0 }
  0x74   : > { %391 = vmatpush1.bf16.msra.mxu0 %v876_v6  ;;  %775 = vmatpush3.bf16.msra.mxu1 %v895_v15  ;;  %v901_v28 = vld [vmem:[#allocation7 + $0x20] sm:$0xff]   ;;  %v277_v30 = vpack.c.bf16 %v276_v27, %v275_v26  ;;  %v903_v31 = vld [vmem:[#allocation7 + $0x28] sm:$0xff]   ;;  %v904_v32 = vld [vmem:[#allocation7 + $0x70] sm:$0xff]   ;;  %s1074_s22 = smov [#allocation8]  }
  0x75   : > { %392 = vmatprep.subr.bf16.mxu0 %v877_v7  ;;  %776 = vmatprep.subr.bf16.mxu1 %v896_v16  ;;  %v905_v33 = vld [vmem:[#allocation7 + $0x30] sm:$0xff]   ;;  %v906_v34 = vld [vmem:[#allocation7 + $0x78] sm:$0xff]   ;;  %v294_v39 = vld [vmem:[%s1363_s2] sm:$0x3]  ;;  %p996_p2 = pnand %p995_p11, %p1380_p0  ;;  %s998_s6 = sshll.u32 %s1074_s22, 4  ;;  %s999_s6 = int_to_ptr.vmem [resolvable:$false] %s998_s6 }
  0x76   : > { %v907_v35 = vld [vmem:[#allocation7 + $0x38] sm:$0xff]   ;;  %v299_v41 = vrot.slane %v294_v39, %v298_v38  ;;  %v303_v42 = vrot.slane %v294_v39, %v302_v40  ;;  %v748_v58 = vld [vmem:[%s1365_s4] ss:$0 sm:$0xff]  ;;  %s1000_s10 = scalar_lea.vmem %s999_s6, 512  ;;  %p1001_p5 = scmp.lt.s32.totalorder %s1312_s13, %s999_s6 }
  0x77   : > { %p997_p3 = pneg %p996_p2  ;;  %p1002_p9 = scmp.lt.s32.totalorder %s1000_s10, %s994_s9 }
  0x78   : > { %393 = vmatpush1.bf16.msra.mxu0 %v879_v8  ;;  %777 = vmatpush3.bf16.msra.mxu1 %v897_v19 }
  0x79   : > { %394 = vmatprep.subr.bf16.mxu0 %v880_v9  ;;  %778 = vmatprep.subr.bf16.mxu1 %v898_v20  ;;  %p1003_p12 = por %p1002_p9, %p1001_p5 }
  0x7b   : > { %p1004_p1 = pnand %p1003_p12, %p997_p3 }
  0x7c   : > { %395 = vmatpush1.bf16.msra.mxu0 %v882_v11  ;;  %779 = vmatpush3.bf16.msra.mxu1 %v899_v23 }
  0x7d   : > { %396 = vmatprep.subr.bf16.mxu0 %v883_v13  ;;  %780 = vmatprep.subr.bf16.mxu1 %v900_v24 }
  0x80   : > { %397 = vmatpush1.bf16.msra.mxu0 %v885_v17  ;;  %781 = vmatpush3.bf16.msra.mxu1 %v901_v28 }
  0x81   : > { %398 = vmatprep.subr.bf16.mxu0 %v886_v18  ;;  %782 = vmatprep.subr.bf16.mxu1 %v902_v29 }
  0x84   : > { %399 = vmatpush1.bf16.msra.mxu0 %v888_v21  ;;  %783 = vmatpush3.bf16.msra.mxu1 %v903_v31 }
  0x85   : > { %400 = vmatprep.subr.bf16.mxu0 %v889_v22  ;;  %784 = vmatprep.subr.bf16.mxu1 %v904_v32 }
  0x88   : > { %401 = vmatpush1.bf16.msra.mxu0 %v891_v25  ;;  %785 = vmatpush3.bf16.msra.mxu1 %v905_v33 }
  0x89   : > { %786 = vmatprep.subr.bf16.mxu1 %v906_v34 }
  0x8b   : > { %419 = vmatmul.mubr.bf16.vlgmr.msra.gmra.mrb[0].mxu0 %v277_v30 }
  0x8c   : > { %787 = vmatpush3.bf16.msra.mxu1 %v907_v35 }
 0x15e   : > { %v420_v43 = vpop.f32.mrb[0].mxu0 }
 0x15f   : > { %v421_v44 = vadd.f32 %v420_v43, %v299_v41  ;;  %v422_v45 = vpop.f32.mrb[1].mxu0 }
 0x160   : > { %v423_v46 = vadd.f32 %v422_v45, %v303_v42  ;;  %v424_v47 = vpop.f32.mrb[2].mxu0 }
 0x161   : > { %v425_v48 = vadd.f32 %v424_v47, %v299_v41  ;;  %v426_v49 = vpop.f32.mrb[3].mxu0  ;;  %v429_v51 = vmax.f32 %v421_v44, 0.0 }
 0x162   : > { %v427_v50 = vadd.f32 %v426_v49, %v303_v42  ;;  %v430_v53 = vmax.f32 %v423_v46, 0.0 }
 0x163   : > { %v431_v52 = vmax.f32 %v425_v48, 0.0 }
 0x164   : > { %v432_v54 = vmax.f32 %v427_v50, 0.0 }
 0x165   : > { %v433_v55 = vpack.c.bf16 %v431_v52, %v429_v51 }
 0x166   : > { %v434_v56 = vpack.c.bf16 %v432_v54, %v430_v53 }
 0x168   : > { %602 = vmatprep.mubr.bf16.mxu1 %v434_v56 }
 0x169   : > { %603 = vmatmul.mubr.bf16.vlgmr.msra.gmra.mrb[0].mxu1 %v433_v55 }
 0x23c   : > { %v788_v57 = vpop.f32.mrb[0].mxu1 }
 0x23d   : > { %v789_v59 = vpop.f32.mrb[1].mxu1 }
 0x23e   : > { %v790_v60 = vadd.f32 %v789_v59, %v788_v57  ;;  %v791_v61 = vpop.f32.mrb[2].mxu1 }
 0x23f   : > { %v792_v62 = vpop.f32.mrb[3].mxu1 }
 0x240   : > { %v605_v63 = vadd.f32 %v790_v60, %v748_v58  ;;  %v793_v0 = vadd.f32 %v792_v62, %v791_v61 }
 0x242   : > { %611 = vst [vmem:[%s271_s28] sm:$0xff] %v605_v63  ;;  %v608_v1 = vadd.f32 %v793_v0, %v748_v58 }
 0x244   : > { %612 = vst [vmem:[%s271_s28 + $0x8] sm:$0xff] %v608_v1 }
 0x245   : > { %1007 = shalt.err (!%p1004_p1)
}
 0x246   : > { %s1008_s14 = scalar_lea.hbm %s1317_s12, 256  ;;  %s1012_s15 = scalar_lea.hbm %s1366_s5, 512 }
 0x247   : > { %p1009_p13 = scmp.ne.s32.totalorder %s1317_s12, %s1008_s14  ;;  %p1013_p4 = scmp.lt.u32.totalorder %s1317_s12, %s1366_s5 }
 0x248   : > { %p1014_p7 = scmp.lt.u32.totalorder %s1012_s15, %s1008_s14  ;;  %p1016_p11 = scmp.lt.u32.totalorder %s1008_s14, %s1317_s12 }
 0x249   : > { %p1010_p6 = pnand %p1009_p13, %p1380_p0 }
 0x24a   : > { %p1015_p8 = por %p1014_p7, %p1013_p4 }
 0x24b   : > { %p1011_p10 = pneg %p1010_p6 }
 0x24c   : > { %p1017_p2 = por %p1016_p11, %p1015_p8 }
 0x24e   : > { %p1018_p3 = pnand %p1017_p2, %p1011_p10 }
 0x250   : > { %1021 = shalt.err (!%p1018_p3)
}
 0x251   : > { %s1075_s17 = smov 128   ;;  %s1076_s11 = smov 8  }
 0x252   : > { %804 = dma.vmem_to_hbm [thread:$0]  (%p1380_p0), %s1312_s13, 256, %s1317_s12, %s614_s30, %s1075_s17, %s1075_s17, %s1076_s11  }
 0x253 PF: > { %s642_s29 = sand.u32 1, %s1052_s18   ;;  %p1381_p5 = scmp.ne.s32.totalorder %s1371_s25, 0 }
 0x254   : > { %p1382_p9 = scmp.ge.s32.totalorder %s1064_s21, 2  ;;  %s643_s9 = scalar_lea.sflag [#allocation4], %s642_s29 }
 0x256   : > { %p818_p12 = pnand %p1382_p9, %p1381_p5 }
 0x258   : > { %1047 = dma.done.wait (!%p818_p12), %s643_s9, 256  }
 0x259   : > { %1049 = vsyncadd (!%p818_p12), %s643_s9, 4294967040  ;;  %p19_p1 = scmp.ge.s32.totalorder %s1220_s23, 4   ;;  %s1383_s18 = smov %s1056_s19 }
 0x25a   : > { %s1384_s19 = smov %s1060_s20  ;;  %s1385_s20 = smov %s1229_s7 }
 0x25b   : > { %s1386_s21 = smov %s1220_s23  ;;  %21 = sbr.rel (!%p19_p1) target bundleno = 6 (0x6), region = 93 }
 0x262   :  { %648 = vsyncpa [#allocation3], 1 }
 0x263   :  { %650 = vsyncpa [#allocation3 + $0x1], 1 }
 0x264   :  { %651 = vsyncpa [#allocation6], 1 }
 0x265   :  { %652 = vsyncpa [#allocation4], 1 }
 0x266   :  { %654 = vsyncpa [#allocation4 + $0x1], 1 }

</bundles_post_ra>
